<compile_context>
chip_gen: v5e
topology: v5e:2x2
jax: 0.10.0
libtpu: 0.0.40
codegen_flags: <defaults>
</compile_context>

<pallas_src>
import jax
import jax.numpy as jnp
from jax.experimental import pallas as pl
from jax.experimental.pallas import tpu as pltpu


def _round_up(x, m):
    return (x + m - 1) // m * m


def ranknet_kernel(x_ref, w1_ref, b1_ref, w2_ref, b2_ref, w3t_ref, out_ref):
    """One batch tile: fused two-branch MLP + sigmoid(w3^T (h1 - h2))."""
    tile_b = x_ref.shape[0] // 2

    x = x_ref[...]                                                     # (2T, F)

    # Linear 1 + ReLU (dropout = identity in eval mode).
    h = jnp.dot(x, w1_ref[...], preferred_element_type=jnp.float32) + b1_ref[...]
    h = jnp.maximum(h, 0.0)

    # Linear 2 + ReLU.
    h = jnp.dot(h.astype(w2_ref.dtype), w2_ref[...],
                preferred_element_type=jnp.float32) + b2_ref[...]
    h = jnp.maximum(h, 0.0)                                            # (2T, H2) f32

    # Linear 3 with bias cancellation: s1 - s2 = w3^T (h1 - h2); b3 cancels.
    d = h[:tile_b, :] - h[tile_b:, :]                                  # (T, H2)
    s = jax.lax.dot_general(
        w3t_ref[...], d,
        dimension_numbers=(((1,), (1,)), ((), ())),
        preferred_element_type=jnp.float32)                            # (1, T)

    out_ref[...] = jax.nn.sigmoid(s)[None]                             # (1, 1, T)


def ranknet_forward(x1, x2, params, *, tile_b=2048, compute_dtype=jnp.float32):
    """params = (w1, b1, w2, b2, w3, b3); weights (in, out), biases (1, out)."""
    w1, b1, w2, b2, w3, b3 = params
    del b3  # cancels in sigmoid(s1 - s2)
    B, F = x1.shape
    H1 = w1.shape[1]
    H2 = w2.shape[1]

    # Lane-dense output needs a 128-multiple tile; don't over-pad tiny batches.
    tb = min(_round_up(tile_b, 128), _round_up(max(B, 1), 128))
    b_pad = _round_up(B, tb)
    num_tiles = b_pad // tb

    # Single fused materialization: cast + pad + stack into (num_tiles, 2*tb, F)
    # so tile i's x1 rows and x2 rows are contiguous -> one BlockSpec, no
    # in-kernel concat.  (XLA fuses convert/pad/concatenate into one pass.)
    x1c = x1.astype(compute_dtype)
    x2c = x2.astype(compute_dtype)
    if b_pad != B:
        pad = ((0, b_pad - B), (0, 0))
        x1c = jnp.pad(x1c, pad)
        x2c = jnp.pad(x2c, pad)
    x_stk = jnp.concatenate(
        [x1c.reshape(num_tiles, tb, F), x2c.reshape(num_tiles, tb, F)],
        axis=1)                                                        # (nt, 2tb, F)

    w1c = w1.astype(compute_dtype)
    w2c = w2.astype(compute_dtype)
    w3t = w3.reshape(1, H2).astype(jnp.float32)   # row vector for lane-dense dot
    b1f = b1.reshape(1, H1).astype(jnp.float32)
    b2f = b2.reshape(1, H2).astype(jnp.float32)

    const = lambda i: (0, 0)   # weights/biases resident in VMEM across grid steps

    # VMEM budget: last dim lane-pads to >=128; inputs are double-buffered.
    itemsize = jnp.dtype(compute_dtype).itemsize
    f_pad = max(_round_up(F, 128), 128)
    h_pad = max(_round_up(max(H1, H2), 128), 128)
    vmem_est = (2 * (2 * tb) * f_pad * itemsize      # double-buffered input tiles
                + 2 * (2 * tb) * h_pad * 4           # f32 intermediates h1/h2
                + 8 * 1024 * 1024)                   # weights, output, slack
    vmem_limit = int(min(max(vmem_est, 32 * 1024 * 1024), 48 * 1024 * 1024))

    out3d = pl.pallas_call(
        ranknet_kernel,
        out_shape=jax.ShapeDtypeStruct((num_tiles, 1, tb), jnp.float32),
        grid=(num_tiles,),
        in_specs=[
            pl.BlockSpec((None, 2 * tb, F), lambda i: (i, 0, 0)),  # stacked x tile
            pl.BlockSpec((F, H1), const),                          # w1
            pl.BlockSpec((1, H1), const),                          # b1
            pl.BlockSpec((H1, H2), const),                         # w2
            pl.BlockSpec((1, H2), const),                          # b2
            pl.BlockSpec((1, H2), const),                          # w3^T
        ],
        out_specs=pl.BlockSpec((1, 1, tb), lambda i: (i, 0, 0)),
        compiler_params=pltpu.CompilerParams(
            dimension_semantics=("parallel",),
            vmem_limit_bytes=vmem_limit),
    )(x_stk, w1c, b1f, w2c, b2f, w3t)

    return out3d.reshape(-1)[:B].reshape(B, 1)


def init_params(key, n_feature, h1_units, h2_units):
    """Mimics torch.nn.Linear's uniform(-1/sqrt(in), 1/sqrt(in)) init."""
    ks = jax.random.split(key, 6)

    def linear(kw, kb, fan_in, fan_out):
        bound = 1.0 / jnp.sqrt(fan_in)
        w = jax.random.uniform(kw, (fan_in, fan_out), jnp.float32, -bound, bound)
        b = jax.random.uniform(kb, (1, fan_out), jnp.float32, -bound, bound)
        return w, b

    w1, b1 = linear(ks[0], ks[1], n_feature, h1_units)
    w2, b2 = linear(ks[2], ks[3], h1_units, h2_units)
    w3, b3 = linear(ks[4], ks[5], h2_units, 1)
    return (w1, b1, w2, b2, w3, b3)


def reference_forward(x1, x2, params, compute_dtype=jnp.float32):
    """Plain-JAX reference applying the same compute-dtype casts as the kernel."""
    w1, b1, w2, b2, w3, b3 = params

    def mlp(x):
        h = jnp.dot(x.astype(compute_dtype), w1.astype(compute_dtype),
                    preferred_element_type=jnp.float32) + b1
        h = jnp.maximum(h, 0.0)
        h = jnp.dot(h.astype(compute_dtype), w2.astype(compute_dtype),
                    preferred_element_type=jnp.float32) + b2
        h = jnp.maximum(h, 0.0)
        return jnp.dot(h, w3, preferred_element_type=jnp.float32) + b3

    return jax.nn.sigmoid(mlp(x1) - mlp(x2))


if __name__ == "__main__":
    key = jax.random.PRNGKey(0)
    k_params, k_x1, k_x2 = jax.random.split(key, 3)

    batch = 8
    n_feature = 32
    h1_units = 32
    h2_units = 16

    params = init_params(k_params, n_feature, h1_units, h2_units)
    x1 = jax.random.normal(k_x1, (batch, n_feature), jnp.float32)
    x2 = jax.random.normal(k_x2, (batch, n_feature), jnp.float32)

    # f32 path.
    out = jax.block_until_ready(ranknet_forward(x1, x2, params))
    ref = reference_forward(x1, x2, params)
    assert out.shape == (batch, 1), out.shape
    assert jnp.allclose(out, ref, atol=1e-5, rtol=1e-5), (out, ref)

    # bf16 MXU-input path (recommended on v5e/v6e/v7x for this DMA-bound kernel);
    # compared against a reference with matching casts, so the tolerance only
    # covers accumulation-order differences.
    out_bf16 = jax.block_until_ready(
        ranknet_forward(x1, x2, params, compute_dtype=jnp.bfloat16))
    ref_bf16 = reference_forward(x1, x2, params, compute_dtype=jnp.bfloat16)
    assert out_bf16.shape == (batch, 1), out_bf16.shape
    assert jnp.allclose(out_bf16, ref_bf16, atol=5e-3, rtol=5e-3), (out_bf16, ref_bf16)

    # Multi-tile path (exercises the grid with >1 tile, default tile_b=2048).
    k_b1, k_b2 = jax.random.split(k_x1)
    big_b = 5000
    xb1 = jax.random.normal(k_b1, (big_b, n_feature), jnp.float32)
    xb2 = jax.random.normal(k_b2, (big_b, n_feature), jnp.float32)
    out_big = jax.block_until_ready(ranknet_forward(xb1, xb2, params))
    ref_big = reference_forward(xb1, xb2, params)
    assert out_big.shape == (big_b, 1), out_big.shape
    assert jnp.allclose(out_big, ref_big, atol=1e-5, rtol=1e-5)

    print("KERNEL_OK")
</pallas_src>

<mosaic_0001>
module attributes {stable_mosaic.version = 11 : i64} {
  func.func @ranknet_kernel(%arg0: i32, %arg1: memref<1x256x32xf32, #tpu.memory_space<vmem>>, %arg2: memref<32x32xf32, #tpu.memory_space<vmem>>, %arg3: memref<1x32xf32, #tpu.memory_space<vmem>>, %arg4: memref<32x16xf32, #tpu.memory_space<vmem>>, %arg5: memref<1x16xf32, #tpu.memory_space<vmem>>, %arg6: memref<1x16xf32, #tpu.memory_space<vmem>>, %arg7: memref<1x1x128xf32, #tpu.memory_space<vmem>>) attributes {dimension_semantics = [#tpu.dimension_semantics<parallel>], iteration_bounds = array<i64: 1>, scalar_prefetch = 0 : i64, scratch_operands = 0 : i64, tpu.core_type = #tpu.core_type<tc>, window_params = [{transform_indices = @transform_0, window_bounds = array<i64: 1, 256, 32>}, {pipeline_mode = #tpu.pipeline_mode<synchronous>, transform_indices = @transform_1, window_bounds = array<i64: 32, 32>}, {pipeline_mode = #tpu.pipeline_mode<synchronous>, transform_indices = @transform_2, window_bounds = array<i64: 1, 32>}, {pipeline_mode = #tpu.pipeline_mode<synchronous>, transform_indices = @transform_3, window_bounds = array<i64: 32, 16>}, {pipeline_mode = #tpu.pipeline_mode<synchronous>, transform_indices = @transform_4, window_bounds = array<i64: 1, 16>}, {pipeline_mode = #tpu.pipeline_mode<synchronous>, transform_indices = @transform_5, window_bounds = array<i64: 1, 16>}, {transform_indices = @transform_6, window_bounds = array<i64: 1, 1, 128>}]} {
    %c0 = arith.constant 0 : index
    %c0_0 = arith.constant 0 : index
    %c0_1 = arith.constant 0 : index
    %0 = vector.load %arg1[%c0, %c0_0, %c0_1] : memref<1x256x32xf32, #tpu.memory_space<vmem>>, vector<1x256x32xf32>
    %1 = vector.shape_cast %0 : vector<1x256x32xf32> to vector<256x32xf32>
    %c0_2 = arith.constant 0 : index
    %c0_3 = arith.constant 0 : index
    %2 = vector.load %arg2[%c0_2, %c0_3] : memref<32x32xf32, #tpu.memory_space<vmem>>, vector<32x32xf32>
    %cst = arith.constant dense<0.000000e+00> : vector<256x32xf32>
    %3 = tpu.matmul %1, %2, %cst {dimension_numbers = #tpu.dot_dimension_numbers<[1], [0], [0], [1], [0, 0, 1, 1], [], []>} : vector<256x32xf32>, vector<32x32xf32>, vector<256x32xf32> -> vector<256x32xf32>
    %c0_4 = arith.constant 0 : index
    %c0_5 = arith.constant 0 : index
    %4 = vector.load %arg3[%c0_4, %c0_5] : memref<1x32xf32, #tpu.memory_space<vmem>>, vector<1x32xf32>
    %5 = vector.broadcast %4 : vector<1x32xf32> to vector<256x32xf32>
    %6 = arith.addf %3, %5 : vector<256x32xf32>
    %cst_6 = arith.constant 0.000000e+00 : f32
    %7 = vector.broadcast %cst_6 : f32 to vector<256x32xf32>
    %8 = arith.maximumf %6, %7 : vector<256x32xf32>
    %c0_7 = arith.constant 0 : index
    %c0_8 = arith.constant 0 : index
    %9 = vector.load %arg4[%c0_7, %c0_8] : memref<32x16xf32, #tpu.memory_space<vmem>>, vector<32x16xf32>
    %cst_9 = arith.constant dense<0.000000e+00> : vector<256x16xf32>
    %10 = tpu.matmul %8, %9, %cst_9 {dimension_numbers = #tpu.dot_dimension_numbers<[1], [0], [0], [1], [0, 0, 1, 1], [], []>} : vector<256x32xf32>, vector<32x16xf32>, vector<256x16xf32> -> vector<256x16xf32>
    %c0_10 = arith.constant 0 : index
    %c0_11 = arith.constant 0 : index
    %11 = vector.load %arg5[%c0_10, %c0_11] : memref<1x16xf32, #tpu.memory_space<vmem>>, vector<1x16xf32>
    %12 = vector.broadcast %11 : vector<1x16xf32> to vector<256x16xf32>
    %13 = arith.addf %10, %12 : vector<256x16xf32>
    %cst_12 = arith.constant 0.000000e+00 : f32
    %14 = vector.broadcast %cst_12 : f32 to vector<256x16xf32>
    %15 = arith.maximumf %13, %14 : vector<256x16xf32>
    %16 = vector.extract_strided_slice %15 {offsets = [0, 0], sizes = [128, 16], strides = [1, 1]} : vector<256x16xf32> to vector<128x16xf32>
    %17 = vector.extract_strided_slice %15 {offsets = [128, 0], sizes = [128, 16], strides = [1, 1]} : vector<256x16xf32> to vector<128x16xf32>
    %18 = arith.subf %16, %17 : vector<128x16xf32>
    %c0_13 = arith.constant 0 : index
    %c0_14 = arith.constant 0 : index
    %19 = vector.load %arg6[%c0_13, %c0_14] : memref<1x16xf32, #tpu.memory_space<vmem>>, vector<1x16xf32>
    %cst_15 = arith.constant dense<0.000000e+00> : vector<1x128xf32>
    %20 = tpu.matmul %19, %18, %cst_15 {dimension_numbers = #tpu.dot_dimension_numbers<[1], [1], [0], [0], [0, 0, 1, 0], [], []>} : vector<1x16xf32>, vector<128x16xf32>, vector<1x128xf32> -> vector<1x128xf32>
    %21 = arith.negf %20 : vector<1x128xf32>
    %22 = math.exp %21 : vector<1x128xf32>
    %cst_16 = arith.constant 1.000000e+00 : f32
    %23 = vector.broadcast %cst_16 : f32 to vector<1x128xf32>
    %24 = arith.addf %23, %22 : vector<1x128xf32>
    %25 = arith.divf %23, %24 : vector<1x128xf32>
    %26 = vector.shape_cast %25 : vector<1x128xf32> to vector<1x1x128xf32>
    %c0_17 = arith.constant 0 : index
    %c0_18 = arith.constant 0 : index
    %c0_19 = arith.constant 0 : index
    %27 = vector.load %arg7[%c0_17, %c0_18, %c0_19] : memref<1x1x128xf32, #tpu.memory_space<vmem>>, vector<1x1x128xf32>
    tpu.vector_store %arg7[%c0_17, %c0_18, %c0_19], %26 {strides = array<i32>} : memref<1x1x128xf32, #tpu.memory_space<vmem>>, vector<1x1x128xf32>,
    return
  }
  func.func @transform_0(%arg0: i32) -> (i32, i32, i32) {
    %c0_i32 = arith.constant 0 : i32
    %c0_i32_0 = arith.constant 0 : i32
    %c0_i32_1 = arith.constant 0 : i32
    return %arg0, %c0_i32, %c0_i32_0 : i32, i32, i32
  }
  func.func @transform_1(%arg0: i32) -> (i32, i32) {
    %c0_i32 = arith.constant 0 : i32
    %c0_i32_0 = arith.constant 0 : i32
    %c0_i32_1 = arith.constant 0 : i32
    return %c0_i32, %c0_i32_0 : i32, i32
  }
  func.func @transform_2(%arg0: i32) -> (i32, i32) {
    %c0_i32 = arith.constant 0 : i32
    %c0_i32_0 = arith.constant 0 : i32
    %c0_i32_1 = arith.constant 0 : i32
    return %c0_i32, %c0_i32_0 : i32, i32
  }
  func.func @transform_3(%arg0: i32) -> (i32, i32) {
    %c0_i32 = arith.constant 0 : i32
    %c0_i32_0 = arith.constant 0 : i32
    %c0_i32_1 = arith.constant 0 : i32
    return %c0_i32, %c0_i32_0 : i32, i32
  }
  func.func @transform_4(%arg0: i32) -> (i32, i32) {
    %c0_i32 = arith.constant 0 : i32
    %c0_i32_0 = arith.constant 0 : i32
    %c0_i32_1 = arith.constant 0 : i32
    return %c0_i32, %c0_i32_0 : i32, i32
  }
  func.func @transform_5(%arg0: i32) -> (i32, i32) {
    %c0_i32 = arith.constant 0 : i32
    %c0_i32_0 = arith.constant 0 : i32
    %c0_i32_1 = arith.constant 0 : i32
    return %c0_i32, %c0_i32_0 : i32, i32
  }
  func.func @transform_6(%arg0: i32) -> (i32, i32, i32) {
    %c0_i32 = arith.constant 0 : i32
    %c0_i32_0 = arith.constant 0 : i32
    %c0_i32_1 = arith.constant 0 : i32
    return %arg0, %c0_i32, %c0_i32_0 : i32, i32, i32
  }
}

</mosaic_0001>

<bundles_post_ra>
// kernel: tpu_custom_call.1
= control target key start
LH: loop header
LB: loop body
LE: loop exit
PB: predicated region body
PF: predicated region fallthrough
CT: control target
= control target key end

     0   :  { %vm64_vm0 = vcmask 261120   ;;  %s1144_s0 = inlined_call_operand.vmem [shape: f32[1,256,32], index: 0, kind: input, shape index: {}]   ;;  %s1145_s1 = inlined_call_operand.vmem [shape: f32[32,32], index: 1, kind: input, shape index: {}]   ;;  %s1146_s2 = inlined_call_operand.vmem [shape: f32[1,32], index: 2, kind: input, shape index: {}]   ;;  %s1147_s3 = inlined_call_operand.vmem [shape: f32[32,16], index: 3, kind: input, shape index: {}]   ;;  %s1148_s4 = inlined_call_operand.vmem [shape: f32[1,16], index: 4, kind: input, shape index: {}]   ;;  %s1149_s5 = inlined_call_operand.vmem [shape: f32[1,16], index: 5, kind: input, shape index: {}]   ;;  %s1150_s6 = inlined_call_operand.hbm [shape: f32[1,1,128], index: 6, kind: output, shape index: {}]  }
   0x1   :  { %v59_v0 = vld [vmem:[%s1145_s1 + $0x18] sm:$0xff]  ;;  %v58_v1 = vld [vmem:[%s1145_s1 + $0x10] sm:$0xff]  ;;  %v57_v2 = vld [vmem:[%s1145_s1 + $0x8] sm:$0xff] }
   0x2   :  { %173 = vmatpush.msra.mxu0 %v59_v0  ;;  %762 = vmatpush.msra.mxu3 %v59_v0  ;;  %v56_v3 = vld [vmem:[%s1145_s1] sm:$0xff]  ;;  %v41_v5 = vld [vmem:[%s1144_s0 + $0x88] sm:$0xff] }
   0x3   :  { %v24_v4 = vld [vmem:[%s1144_s0] sm:$0xff] }
   0x4   :  { %174 = vmatpush.msra.mxu0 %v58_v1  ;;  %763 = vmatpush.msra.mxu3 %v58_v1 }
   0x6   :  { %175 = vmatpush.msra.mxu0 %v57_v2  ;;  %764 = vmatpush.msra.mxu3 %v57_v2 }
   0x7   :  { %11 = vsyncpa [#allocation3], 0  ;;  %v25_v6 = vld [vmem:[%s1144_s0 + $0x8] sm:$0xff]  ;;  %v42_v7 = vld [vmem:[%s1144_s0 + $0x90] sm:$0xff]  ;;  %vm572_vm1 = vcmask 130048   ;;  %s803_s28 = smov [#allocation2]  }
   0x8   :  { %176 = vmatpush.msra.mxu0 %v56_v3  ;;  %765 = vmatpush.msra.mxu3 %v56_v3  ;;  %v26_v8 = vld [vmem:[%s1144_s0 + $0x10] sm:$0xff]  ;;  %v43_v9 = vld [vmem:[%s1144_s0 + $0x98] sm:$0xff]  ;;  %v44_v11 = vld [vmem:[%s1144_s0 + $0xa0] sm:$0xff]  ;;  %s669_s29 = sshll.u32 %s803_s28, 4  ;;  %s670_s29 = int_to_ptr.vmem [resolvable:$true] %s669_s29 }
   0x9   :  { %680 = vmatmul.msk.f32.vlgmr.msra.gmra.mxu0 %vm64_vm0, %v24_v4  ;;  %697 = vmatmul.msk.f32.vlgmr.msra.gmra.mxu3 %vm64_vm0, %v41_v5  ;;  %v27_v10 = vld [vmem:[%s1144_s0 + $0x18] sm:$0xff]  ;;  %v28_v12 = vld [vmem:[%s1144_s0 + $0x20] sm:$0xff]  ;;  %v45_v13 = vld [vmem:[%s1144_s0 + $0xa8] sm:$0xff] }
   0xa   :  { %v29_v14 = vld [vmem:[%s1144_s0 + $0x28] sm:$0xff]  ;;  %v46_v15 = vld [vmem:[%s1144_s0 + $0xb0] sm:$0xff]  ;;  %v47_v17 = vld [vmem:[%s1144_s0 + $0xb8] sm:$0xff] }
   0xb   :  { %v30_v16 = vld [vmem:[%s1144_s0 + $0x30] sm:$0xff]  ;;  %v31_v18 = vld [vmem:[%s1144_s0 + $0x38] sm:$0xff]  ;;  %v48_v19 = vld [vmem:[%s1144_s0 + $0xc0] sm:$0xff] }
   0xc   :  { %v32_v20 = vld [vmem:[%s1144_s0 + $0x40] sm:$0xff]  ;;  %v49_v21 = vld [vmem:[%s1144_s0 + $0xc8] sm:$0xff]  ;;  %v50_v23 = vld [vmem:[%s1144_s0 + $0xd0] sm:$0xff] }
   0xd   :  { %v33_v22 = vld [vmem:[%s1144_s0 + $0x48] sm:$0xff]  ;;  %v34_v24 = vld [vmem:[%s1144_s0 + $0x50] sm:$0xff]  ;;  %v51_v25 = vld [vmem:[%s1144_s0 + $0xd8] sm:$0xff] }
   0xe   :  { %v35_v26 = vld [vmem:[%s1144_s0 + $0x58] sm:$0xff]  ;;  %v52_v27 = vld [vmem:[%s1144_s0 + $0xe0] sm:$0xff]  ;;  %v308_v29 = vld [vmem:[%s1147_s3 + $0x10] sm:$0xff] }
   0xf   :  { %v309_v28 = vld [vmem:[%s1147_s3 + $0x18] sm:$0xff]  ;;  %v36_v30 = vld [vmem:[%s1144_s0 + $0x60] sm:$0xff]  ;;  %v53_v31 = vld [vmem:[%s1144_s0 + $0xe8] sm:$0xff] }
  0x10   :  { %422 = vmatpush.msra.mxu1 %v309_v28  ;;  %766 = vmatpush.msra.mxu2 %v309_v28  ;;  %v307_v32 = vld [vmem:[%s1147_s3 + $0x8] sm:$0xff]  ;;  %v306_v33 = vld [vmem:[%s1147_s3] sm:$0xff]  ;;  %v54_v35 = vld [vmem:[%s1144_s0 + $0xf0] sm:$0xff] }
  0x11   :  { %681 = vmatmul.msk.f32.gmra.mxu0 %vm64_vm0, %v25_v6  ;;  %698 = vmatmul.msk.f32.gmra.mxu3 %vm64_vm0, %v42_v7  ;;  %v37_v34 = vld [vmem:[%s1144_s0 + $0x68] sm:$0xff]  ;;  %v38_v36 = vld [vmem:[%s1144_s0 + $0x70] sm:$0xff]  ;;  %v55_v37 = vld [vmem:[%s1144_s0 + $0xf8] sm:$0xff] }
  0x12   :  { %423 = vmatpush.msra.mxu1 %v308_v29  ;;  %767 = vmatpush.msra.mxu2 %v308_v29  ;;  %v39_v38 = vld [vmem:[%s1144_s0 + $0x78] sm:$0xff]  ;;  %v990_v39 = vld [vmem:[%s1146_s2] ss:$0 sm:$0xff] }
  0x13   :  { %v40_v41 = vld [vmem:[%s1144_s0 + $0x80] sm:$0xff] }
  0x14   :  { %424 = vmatpush.msra.mxu1 %v307_v32  ;;  %768 = vmatpush.msra.mxu2 %v307_v32 }
  0x16   :  { %425 = vmatpush.msra.mxu1 %v306_v33  ;;  %769 = vmatpush.msra.mxu2 %v306_v33 }
  0x19   :  { %682 = vmatmul.msk.f32.gmra.mxu0 %vm64_vm0, %v26_v8  ;;  %699 = vmatmul.msk.f32.gmra.mxu3 %vm64_vm0, %v43_v9 }
  0x21   :  { %683 = vmatmul.msk.f32.gmra.mxu0 %vm64_vm0, %v27_v10  ;;  %700 = vmatmul.msk.f32.gmra.mxu3 %vm64_vm0, %v44_v11 }
  0x29   :  { %684 = vmatmul.msk.f32.gmra.mxu0 %vm64_vm0, %v28_v12  ;;  %701 = vmatmul.msk.f32.gmra.mxu3 %vm64_vm0, %v45_v13 }
  0x31   :  { %685 = vmatmul.msk.f32.gmra.mxu0 %vm64_vm0, %v29_v14  ;;  %702 = vmatmul.msk.f32.gmra.mxu3 %vm64_vm0, %v46_v15 }
  0x39   :  { %686 = vmatmul.msk.f32.gmra.mxu0 %vm64_vm0, %v30_v16  ;;  %703 = vmatmul.msk.f32.gmra.mxu3 %vm64_vm0, %v47_v17 }
  0x41   :  { %687 = vmatmul.msk.f32.gmra.mxu0 %vm64_vm0, %v31_v18  ;;  %704 = vmatmul.msk.f32.gmra.mxu3 %vm64_vm0, %v48_v19 }
  0x49   :  { %688 = vmatmul.msk.f32.gmra.mxu0 %vm64_vm0, %v32_v20  ;;  %705 = vmatmul.msk.f32.gmra.mxu3 %vm64_vm0, %v49_v21 }
  0x51   :  { %689 = vmatmul.msk.f32.gmra.mxu0 %vm64_vm0, %v33_v22  ;;  %706 = vmatmul.msk.f32.gmra.mxu3 %vm64_vm0, %v50_v23 }
  0x59   :  { %690 = vmatmul.msk.f32.gmra.mxu0 %vm64_vm0, %v34_v24  ;;  %707 = vmatmul.msk.f32.gmra.mxu3 %vm64_vm0, %v51_v25 }
  0x61   :  { %691 = vmatmul.msk.f32.gmra.mxu0 %vm64_vm0, %v35_v26  ;;  %708 = vmatmul.msk.f32.gmra.mxu3 %vm64_vm0, %v52_v27 }
  0x69   :  { %692 = vmatmul.msk.f32.gmra.mxu0 %vm64_vm0, %v36_v30  ;;  %709 = vmatmul.msk.f32.gmra.mxu3 %vm64_vm0, %v53_v31 }
  0x71   :  { %693 = vmatmul.msk.f32.gmra.mxu0 %vm64_vm0, %v37_v34  ;;  %710 = vmatmul.msk.f32.gmra.mxu3 %vm64_vm0, %v54_v35 }
  0x79   :  { %694 = vmatmul.msk.f32.gmra.mxu0 %vm64_vm0, %v38_v36  ;;  %711 = vmatmul.msk.f32.gmra.mxu3 %vm64_vm0, %v55_v37 }
  0x81   :  { %695 = vmatmul.msk.f32.gmra.mxu0 %vm64_vm0, %v39_v38 }
  0x86   :  { %v178_v40 = vpop.f32.mrf.mxu0 }
  0x87   :  { %v179_v42 = vadd.f32 %v990_v39, %v178_v40 }
  0x89   :  { %v274_v43 = vmax.f32 %v179_v42, 0.0  ;;  %696 = vmatmul.msk.f32.gmra.mxu0 %vm64_vm0, %v40_v41 }
  0x8b   :  { %712 = vmatmul.msk.f32.vlgmr.msra.gmra.mxu1 %vm64_vm0, %v274_v43 }
  0x8c   :  { %v229_v44 = vpop.f32.mrf.mxu3 }
  0x8d   :  { %v230_v45 = vadd.f32 %v990_v39, %v229_v44 }
  0x8e   :  { %v181_v46 = vpop.f32.mrf.mxu0 }
  0x8f   :  { %v291_v47 = vmax.f32 %v230_v45, 0.0  ;;  %v182_v48 = vadd.f32 %v990_v39, %v181_v46 }
  0x91   :  { %v275_v49 = vmax.f32 %v182_v48, 0.0  ;;  %729 = vmatmul.msk.f32.vlgmr.msra.gmra.mxu2 %vm64_vm0, %v291_v47 }
  0x93   :  { %713 = vmatmul.msk.f32.gmra.mxu1 %vm64_vm0, %v275_v49 }
  0x94   :  { %v232_v50 = vpop.f32.mrf.mxu3 }
  0x95   :  { %v233_v51 = vadd.f32 %v990_v39, %v232_v50 }
  0x96   :  { %v184_v52 = vpop.f32.mrf.mxu0 }
  0x97   :  { %v292_v53 = vmax.f32 %v233_v51, 0.0  ;;  %v185_v54 = vadd.f32 %v990_v39, %v184_v52 }
  0x99   :  { %v276_v55 = vmax.f32 %v185_v54, 0.0  ;;  %730 = vmatmul.msk.f32.gmra.mxu2 %vm64_vm0, %v292_v53 }
  0x9b   :  { %714 = vmatmul.msk.f32.gmra.mxu1 %vm64_vm0, %v276_v55 }
  0x9c   :  { %v235_v56 = vpop.f32.mrf.mxu3 }
  0x9d   :  { %v236_v57 = vadd.f32 %v990_v39, %v235_v56 }
  0x9e   :  { %v187_v58 = vpop.f32.mrf.mxu0 }
  0x9f   :  { %v293_v59 = vmax.f32 %v236_v57, 0.0  ;;  %v188_v60 = vadd.f32 %v990_v39, %v187_v58 }
  0xa1   :  { %v277_v61 = vmax.f32 %v188_v60, 0.0  ;;  %731 = vmatmul.msk.f32.gmra.mxu2 %vm64_vm0, %v293_v59 }
  0xa3   :  { %715 = vmatmul.msk.f32.gmra.mxu1 %vm64_vm0, %v277_v61 }
  0xa4   :  { %v238_v62 = vpop.f32.mrf.mxu3 }
  0xa5   :  { %v239_v63 = vadd.f32 %v990_v39, %v238_v62 }
  0xa6   :  { %v190_v0 = vpop.f32.mrf.mxu0 }
  0xa7   :  { %v294_v1 = vmax.f32 %v239_v63, 0.0  ;;  %v191_v2 = vadd.f32 %v990_v39, %v190_v0 }
  0xa9   :  { %v278_v3 = vmax.f32 %v191_v2, 0.0  ;;  %732 = vmatmul.msk.f32.gmra.mxu2 %vm64_vm0, %v294_v1 }
  0xab   :  { %716 = vmatmul.msk.f32.gmra.mxu1 %vm64_vm0, %v278_v3 }
  0xac   :  { %v241_v4 = vpop.f32.mrf.mxu3 }
  0xad   :  { %v242_v5 = vadd.f32 %v990_v39, %v241_v4 }
  0xae   :  { %v193_v6 = vpop.f32.mrf.mxu0 }
  0xaf   :  { %v295_v7 = vmax.f32 %v242_v5, 0.0  ;;  %v194_v8 = vadd.f32 %v990_v39, %v193_v6 }
  0xb1   :  { %v279_v9 = vmax.f32 %v194_v8, 0.0  ;;  %733 = vmatmul.msk.f32.gmra.mxu2 %vm64_vm0, %v295_v7 }
  0xb3   :  { %717 = vmatmul.msk.f32.gmra.mxu1 %vm64_vm0, %v279_v9 }
  0xb4   :  { %v244_v10 = vpop.f32.mrf.mxu3 }
  0xb5   :  { %v245_v11 = vadd.f32 %v990_v39, %v244_v10 }
  0xb6   :  { %v196_v12 = vpop.f32.mrf.mxu0 }
  0xb7   :  { %v296_v13 = vmax.f32 %v245_v11, 0.0  ;;  %v197_v14 = vadd.f32 %v990_v39, %v196_v12  ;;  %v1065_v11 = vld [vmem:[%s1148_s4] ss:$0 sm:$0xff] }
  0xb9   :  { %v280_v15 = vmax.f32 %v197_v14, 0.0  ;;  %734 = vmatmul.msk.f32.gmra.mxu2 %vm64_vm0, %v296_v13 }
  0xbb   :  { %718 = vmatmul.msk.f32.gmra.mxu1 %vm64_vm0, %v280_v15 }
  0xbc   :  { %v247_v16 = vpop.f32.mrf.mxu3 }
  0xbd   :  { %v248_v17 = vadd.f32 %v990_v39, %v247_v16 }
  0xbe   :  { %v199_v18 = vpop.f32.mrf.mxu0 }
  0xbf   :  { %v297_v19 = vmax.f32 %v248_v17, 0.0  ;;  %v200_v20 = vadd.f32 %v990_v39, %v199_v18 }
  0xc1   :  { %v281_v21 = vmax.f32 %v200_v20, 0.0  ;;  %735 = vmatmul.msk.f32.gmra.mxu2 %vm64_vm0, %v297_v19 }
  0xc3   :  { %719 = vmatmul.msk.f32.gmra.mxu1 %vm64_vm0, %v281_v21 }
  0xc4   :  { %v250_v22 = vpop.f32.mrf.mxu3 }
  0xc5   :  { %v251_v23 = vadd.f32 %v990_v39, %v250_v22 }
  0xc6   :  { %v202_v24 = vpop.f32.mrf.mxu0 }
  0xc7   :  { %v298_v25 = vmax.f32 %v251_v23, 0.0  ;;  %v203_v26 = vadd.f32 %v990_v39, %v202_v24 }
  0xc9   :  { %v282_v27 = vmax.f32 %v203_v26, 0.0  ;;  %736 = vmatmul.msk.f32.gmra.mxu2 %vm64_vm0, %v298_v25 }
  0xcb   :  { %720 = vmatmul.msk.f32.gmra.mxu1 %vm64_vm0, %v282_v27 }
  0xcc   :  { %v253_v28 = vpop.f32.mrf.mxu3 }
  0xcd   :  { %v254_v29 = vadd.f32 %v990_v39, %v253_v28 }
  0xce   :  { %v205_v30 = vpop.f32.mrf.mxu0 }
  0xcf   :  { %v299_v31 = vmax.f32 %v254_v29, 0.0  ;;  %v206_v32 = vadd.f32 %v990_v39, %v205_v30 }
  0xd1   :  { %v283_v33 = vmax.f32 %v206_v32, 0.0  ;;  %737 = vmatmul.msk.f32.gmra.mxu2 %vm64_vm0, %v299_v31 }
  0xd3   :  { %721 = vmatmul.msk.f32.gmra.mxu1 %vm64_vm0, %v283_v33 }
  0xd4   :  { %v256_v34 = vpop.f32.mrf.mxu3 }
  0xd5   :  { %v257_v35 = vadd.f32 %v990_v39, %v256_v34 }
  0xd6   :  { %v208_v36 = vpop.f32.mrf.mxu0 }
  0xd7   :  { %v300_v37 = vmax.f32 %v257_v35, 0.0  ;;  %v209_v38 = vadd.f32 %v990_v39, %v208_v36 }
  0xd9   :  { %v284_v40 = vmax.f32 %v209_v38, 0.0  ;;  %738 = vmatmul.msk.f32.gmra.mxu2 %vm64_vm0, %v300_v37 }
  0xdb   :  { %722 = vmatmul.msk.f32.gmra.mxu1 %vm64_vm0, %v284_v40 }
  0xdc   :  { %v259_v41 = vpop.f32.mrf.mxu3 }
  0xdd   :  { %v260_v42 = vadd.f32 %v990_v39, %v259_v41 }
  0xde   :  { %v211_v43 = vpop.f32.mrf.mxu0 }
  0xdf   :  { %v301_v44 = vmax.f32 %v260_v42, 0.0  ;;  %v212_v45 = vadd.f32 %v990_v39, %v211_v43 }
  0xe1   :  { %v285_v46 = vmax.f32 %v212_v45, 0.0  ;;  %739 = vmatmul.msk.f32.gmra.mxu2 %vm64_vm0, %v301_v44 }
  0xe3   :  { %723 = vmatmul.msk.f32.gmra.mxu1 %vm64_vm0, %v285_v46 }
  0xe4   :  { %v262_v47 = vpop.f32.mrf.mxu3 }
  0xe5   :  { %v263_v48 = vadd.f32 %v990_v39, %v262_v47 }
  0xe6   :  { %v214_v49 = vpop.f32.mrf.mxu0 }
  0xe7   :  { %v302_v50 = vmax.f32 %v263_v48, 0.0  ;;  %v215_v51 = vadd.f32 %v990_v39, %v214_v49 }
  0xe9   :  { %v286_v52 = vmax.f32 %v215_v51, 0.0  ;;  %740 = vmatmul.msk.f32.gmra.mxu2 %vm64_vm0, %v302_v50 }
  0xeb   :  { %724 = vmatmul.msk.f32.gmra.mxu1 %vm64_vm0, %v286_v52 }
  0xec   :  { %v265_v53 = vpop.f32.mrf.mxu3 }
  0xed   :  { %v266_v54 = vadd.f32 %v990_v39, %v265_v53 }
  0xee   :  { %v217_v55 = vpop.f32.mrf.mxu0 }
  0xef   :  { %v303_v56 = vmax.f32 %v266_v54, 0.0  ;;  %v218_v57 = vadd.f32 %v990_v39, %v217_v55 }
  0xf1   :  { %v287_v58 = vmax.f32 %v218_v57, 0.0  ;;  %741 = vmatmul.msk.f32.gmra.mxu2 %vm64_vm0, %v303_v56 }
  0xf3   :  { %725 = vmatmul.msk.f32.gmra.mxu1 %vm64_vm0, %v287_v58 }
  0xf4   :  { %v268_v59 = vpop.f32.mrf.mxu3 }
  0xf5   :  { %v269_v60 = vadd.f32 %v990_v39, %v268_v59 }
  0xf6   :  { %v220_v61 = vpop.f32.mrf.mxu0 }
  0xf7   :  { %v304_v62 = vmax.f32 %v269_v60, 0.0  ;;  %v221_v63 = vadd.f32 %v990_v39, %v220_v61 }
  0xf9   :  { %v288_v0 = vmax.f32 %v221_v63, 0.0  ;;  %742 = vmatmul.msk.f32.gmra.mxu2 %vm64_vm0, %v304_v62 }
  0xfb   :  { %726 = vmatmul.msk.f32.gmra.mxu1 %vm64_vm0, %v288_v0 }
  0xfc   :  { %v271_v1 = vpop.f32.mrf.mxu3 }
  0xfd   :  { %v272_v2 = vadd.f32 %v990_v39, %v271_v1 }
  0xfe   :  { %v223_v3 = vpop.f32.mrf.mxu0 }
  0xff   :  { %v305_v4 = vmax.f32 %v272_v2, 0.0  ;;  %v224_v5 = vadd.f32 %v990_v39, %v223_v3 }
 0x101   :  { %v289_v6 = vmax.f32 %v224_v5, 0.0  ;;  %743 = vmatmul.msk.f32.gmra.mxu2 %vm64_vm0, %v305_v4 }
 0x103   :  { %727 = vmatmul.msk.f32.gmra.mxu1 %vm64_vm0, %v289_v6 }
 0x106   :  { %v226_v7 = vpop.f32.mrf.mxu0 }
 0x107   :  { %v227_v8 = vadd.f32 %v990_v39, %v226_v7 }
 0x108   :  { %v1059_v9 = vpop.f32.mrf.mxu1 }
 0x109   :  { %v290_v10 = vmax.f32 %v227_v8, 0.0 }
 0x10b   :  { %728 = vmatmul.msk.f32.gmra.mxu1 %vm64_vm0, %v290_v10 }
 0x110   :  { %v430_v12 = vpop.f32.mrf.mxu1 }
 0x111   :  { %v431_v13 = vadd.f32 %v1065_v11, %v430_v12 }
 0x113   :  { %v524_v15 = vmax.f32 %v431_v13, 0.0 }
 0x114   :  { %v478_v14 = vpop.f32.mrf.mxu2 }
 0x115   :  { %v479_v16 = vadd.f32 %v1065_v11, %v478_v14 }
 0x117   :  { %v540_v17 = vmax.f32 %v479_v16, 0.0 }
 0x118   :  { %v433_v18 = vpop.f32.mrf.mxu1 }
 0x119   :  { %v1069_v39 = vsub.f32 %v524_v15, %v540_v17  ;;  %v434_v19 = vadd.f32 %v1065_v11, %v433_v18 }
 0x11b   :  { %v525_v21 = vmax.f32 %v434_v19, 0.0 }
 0x11c   :  { %v481_v20 = vpop.f32.mrf.mxu2 }
 0x11d   :  { %v482_v22 = vadd.f32 %v1065_v11, %v481_v20 }
 0x11f   :  { %v541_v23 = vmax.f32 %v482_v22, 0.0 }
 0x120   :  { %v436_v24 = vpop.f32.mrf.mxu1 }
 0x121   :  { %v1073_v25 = vsub.f32 %v525_v21, %v541_v23  ;;  %v437_v26 = vadd.f32 %v1065_v11, %v436_v24 }
 0x123   :  { %v526_v28 = vmax.f32 %v437_v26, 0.0 }
 0x124   :  { %v484_v27 = vpop.f32.mrf.mxu2 }
 0x125   :  { %v485_v29 = vadd.f32 %v1065_v11, %v484_v27 }
 0x127   :  { %v542_v30 = vmax.f32 %v485_v29, 0.0 }
 0x128   :  { %v439_v31 = vpop.f32.mrf.mxu1 }
 0x129   :  { %v1077_v32 = vsub.f32 %v526_v28, %v542_v30  ;;  %v440_v33 = vadd.f32 %v1065_v11, %v439_v31 }
 0x12b   :  { %v527_v35 = vmax.f32 %v440_v33, 0.0 }
 0x12c   :  { %v487_v34 = vpop.f32.mrf.mxu2 }
 0x12d   :  { %v488_v36 = vadd.f32 %v1065_v11, %v487_v34 }
 0x12f   :  { %v543_v37 = vmax.f32 %v488_v36, 0.0 }
 0x130   :  { %v442_v38 = vpop.f32.mrf.mxu1 }
 0x131   :  { %v1081_v40 = vsub.f32 %v527_v35, %v543_v37  ;;  %v443_v41 = vadd.f32 %v1065_v11, %v442_v38 }
 0x133   :  { %v528_v43 = vmax.f32 %v443_v41, 0.0 }
 0x134   :  { %v490_v42 = vpop.f32.mrf.mxu2 }
 0x135   :  { %v491_v44 = vadd.f32 %v1065_v11, %v490_v42 }
 0x137   :  { %v544_v45 = vmax.f32 %v491_v44, 0.0 }
 0x138   :  { %v445_v46 = vpop.f32.mrf.mxu1 }
 0x139   :  { %v1085_v47 = vsub.f32 %v528_v43, %v544_v45  ;;  %v446_v48 = vadd.f32 %v1065_v11, %v445_v46 }
 0x13b   :  { %v529_v50 = vmax.f32 %v446_v48, 0.0 }
 0x13c   :  { %v493_v49 = vpop.f32.mrf.mxu2 }
 0x13d   :  { %v494_v51 = vadd.f32 %v1065_v11, %v493_v49 }
 0x13f   :  { %v545_v52 = vmax.f32 %v494_v51, 0.0 }
 0x140   :  { %v448_v53 = vpop.f32.mrf.mxu1 }
 0x141   :  { %v1089_v54 = vsub.f32 %v529_v50, %v545_v52  ;;  %v449_v55 = vadd.f32 %v1065_v11, %v448_v53 }
 0x143   :  { %v530_v57 = vmax.f32 %v449_v55, 0.0 }
 0x144   :  { %v496_v56 = vpop.f32.mrf.mxu2 }
 0x145   :  { %v497_v58 = vadd.f32 %v1065_v11, %v496_v56 }
 0x147   :  { %v546_v59 = vmax.f32 %v497_v58, 0.0 }
 0x148   :  { %v451_v60 = vpop.f32.mrf.mxu1 }
 0x149   :  { %v1093_v61 = vsub.f32 %v530_v57, %v546_v59  ;;  %v452_v62 = vadd.f32 %v1065_v11, %v451_v60 }
 0x14b   :  { %v531_v0 = vmax.f32 %v452_v62, 0.0 }
 0x14c   :  { %v499_v63 = vpop.f32.mrf.mxu2 }
 0x14d   :  { %v500_v1 = vadd.f32 %v1065_v11, %v499_v63 }
 0x14f   :  { %v547_v2 = vmax.f32 %v500_v1, 0.0 }
 0x150   :  { %v454_v3 = vpop.f32.mrf.mxu1 }
 0x151   :  { %v563_v4 = vsub.f32 %v531_v0, %v547_v2  ;;  %v455_v5 = vadd.f32 %v1065_v11, %v454_v3  ;;  %v428_v0 = vadd.f32 %v1065_v11, %v1059_v9 }
 0x153   :  { %v532_v7 = vmax.f32 %v455_v5, 0.0 }
 0x154   :  { %v502_v6 = vpop.f32.mrf.mxu2 }
 0x155   :  { %v503_v8 = vadd.f32 %v1065_v11, %v502_v6 }
 0x157   :  { %v548_v10 = vmax.f32 %v503_v8, 0.0 }
 0x158   :  { %v457_v12 = vpop.f32.mrf.mxu1 }
 0x159   :  { %v564_v13 = vsub.f32 %v532_v7, %v548_v10  ;;  %v458_v51 = vadd.f32 %v1065_v11, %v457_v12 }
 0x15b   :  { %v533_v57 = vmax.f32 %v458_v51, 0.0 }
 0x15c   :  { %v505_v14 = vpop.f32.mrf.mxu2 }
 0x15d   :  { %v506_v52 = vadd.f32 %v1065_v11, %v505_v14 }
 0x15f   :  { %v549_v58 = vmax.f32 %v506_v52, 0.0 }
 0x160   :  { %v460_v15 = vpop.f32.mrf.mxu1 }
 0x161   :  { %v461_v45 = vadd.f32 %v1065_v11, %v460_v15  ;;  %v565_v60 = vsub.f32 %v533_v57, %v549_v58 }
 0x163   :  { %v534_v53 = vmax.f32 %v461_v45, 0.0 }
 0x164   :  { %v508_v16 = vpop.f32.mrf.mxu2 }
 0x165   :  { %v509_v46 = vadd.f32 %v1065_v11, %v508_v16 }
 0x167   :  { %v550_v55 = vmax.f32 %v509_v46, 0.0 }
 0x168   :  { %v463_v17 = vpop.f32.mrf.mxu1 }
 0x169   :  { %v464_v38 = vadd.f32 %v1065_v11, %v463_v17  ;;  %v566_v59 = vsub.f32 %v534_v53, %v550_v55 }
 0x16b   :  { %v535_v48 = vmax.f32 %v464_v38, 0.0 }
 0x16c   :  { %v511_v18 = vpop.f32.mrf.mxu2 }
 0x16d   :  { %v512_v41 = vadd.f32 %v1065_v11, %v511_v18 }
 0x16f   :  { %v551_v49 = vmax.f32 %v512_v41, 0.0 }
 0x170   :  { %v466_v19 = vpop.f32.mrf.mxu1 }
 0x171   :  { %v467_v33 = vadd.f32 %v1065_v11, %v466_v19  ;;  %v567_v56 = vsub.f32 %v535_v48, %v551_v49 }
 0x173   :  { %v536_v42 = vmax.f32 %v467_v33, 0.0 }
 0x174   :  { %v514_v20 = vpop.f32.mrf.mxu2 }
 0x175   :  { %v515_v34 = vadd.f32 %v1065_v11, %v514_v20 }
 0x177   :  { %v552_v43 = vmax.f32 %v515_v34, 0.0 }
 0x178   :  { %v469_v21 = vpop.f32.mrf.mxu1 }
 0x179   :  { %v470_v27 = vadd.f32 %v1065_v11, %v469_v21  ;;  %v568_v50 = vsub.f32 %v536_v42, %v552_v43 }
 0x17b   :  { %v537_v35 = vmax.f32 %v470_v27, 0.0 }
 0x17c   :  { %v517_v22 = vpop.f32.mrf.mxu2 }
 0x17d   :  { %v518_v28 = vadd.f32 %v1065_v11, %v517_v22 }
 0x17f   :  { %v553_v36 = vmax.f32 %v518_v28, 0.0 }
 0x180   :  { %v472_v23 = vpop.f32.mrf.mxu1 }
 0x181   :  { %v473_v24 = vadd.f32 %v1065_v11, %v472_v23  ;;  %v569_v44 = vsub.f32 %v537_v35, %v553_v36 }
 0x183   :  { %v538_v29 = vmax.f32 %v473_v24, 0.0 }
 0x184   :  { %v520_v26 = vpop.f32.mrf.mxu2 }
 0x185   :  { %v521_v30 = vadd.f32 %v1065_v11, %v520_v26 }
 0x187   :  { %v554_v31 = vmax.f32 %v521_v30, 0.0 }
 0x188   :  { %v475_v62 = vpop.f32.mrf.mxu1 }
 0x189   :  { %v570_v37 = vsub.f32 %v538_v29, %v554_v31  ;;  %v476_v63 = vadd.f32 %v1065_v11, %v475_v62 }
 0x18b   :  { %744 = vmatpush.xpose.msk.msrb.mxu2 %vm572_vm1, %v570_v37 }
 0x18f   :  { %745 = vmatpush.xpose.msk.msrb.mxu2 %vm572_vm1, %v569_v44 }
 0x193   :  { %746 = vmatpush.xpose.msk.msrb.mxu2 %vm572_vm1, %v568_v50 }
 0x197   :  { %747 = vmatpush.xpose.msk.msrb.mxu2 %vm572_vm1, %v567_v56 }
 0x19b   :  { %748 = vmatpush.xpose.msk.msrb.mxu2 %vm572_vm1, %v566_v59 }
 0x19f   :  { %749 = vmatpush.xpose.msk.msrb.mxu2 %vm572_vm1, %v565_v60 }
 0x1a3   :  { %750 = vmatpush.xpose.msk.msrb.mxu2 %vm572_vm1, %v564_v13 }
 0x1a7   :  { %751 = vmatpush.xpose.msk.msrb.mxu2 %vm572_vm1, %v563_v4 }
 0x1ab   :  { %752 = vmatpush.xpose.msk.msrb.mxu2 %vm572_vm1, %v1093_v61  ;;  %v539_v61 = vmax.f32 %v476_v63, 0.0 }
 0x1af   :  { %753 = vmatpush.xpose.msk.msrb.mxu2 %vm572_vm1, %v1089_v54  ;;  %v523_v54 = vmax.f32 %v428_v0, 0.0 }
 0x1b3   :  { %754 = vmatpush.xpose.msk.msrb.mxu2 %vm572_vm1, %v1085_v47  ;;  %v555_v47 = vsub.f32 %v523_v54, %v539_v61 }
 0x1b7   :  { %755 = vmatpush.xpose.msk.msrb.mxu2 %vm572_vm1, %v1081_v40 }
 0x1bb   :  { %756 = vmatpush.xpose.msk.msrb.mxu2 %vm572_vm1, %v1077_v32  ;;  %v571_v32 = vld [vmem:[%s1149_s5] sm:$0x1]  ;;  %s671_s5 = sshll.u32 %s1150_s6, 4  ;;  %s672_s5 = int_to_ptr.hbm [resolvable:$true] %s671_s5 }
 0x1bf   :  { %757 = vmatpush.xpose.msk.msrb.mxu2 %vm572_vm1, %v1073_v25 }
 0x1c3   :  { %758 = vmatpush.xpose.msk.msrb.mxu2 %vm572_vm1, %v1069_v39 }
 0x1c7   :  { %759 = vmatpush.xpose.msk.msrb.mxu2 %vm572_vm1, %v555_v47 }
 0x1ca   :  { %760 = vmatmul.msk.f32.vlgmr.msrb.gmra.mxu2 %vm572_vm1, %v571_v32 }
 0x24d   :  { %v641_v40 = vpop.f32.mrf.mxu2 }
 0x24e   :  { %v761_v1 = vmul.f32 -1.442695, %v641_v40 }
 0x250   :  { %773 = vpow2.f32 %v761_v1 }
 0x256   :  { %v774_v9 = vpop.eup %773 }
 0x257   :  { %v647_v11 = vadd.f32 1.0, %v774_v9 }
 0x259   :  { %775 = vrcp.f32 %v647_v11  ;;  %v659_v4 = vand.u32 2147483648, %v647_v11  ;;  %v657_v5 = vand.u32 2147483647, %v647_v11  ;;  %vm653_vm3 = vweird.f32 %v647_v11 }
 0x25b   :  { %v660_v7 = vor.u32 1.1754944e-38, %v659_v4  ;;  %vm658_vm5 = vcmp.eq.f32.partialorder %v657_v5, 8.507059e+37 }
 0x25f   :  { %v776_v25 = vpop.eup %775 }
 0x260   :  { %v649_v2 = vmul.f32 %v776_v25, %v647_v11  ;;  %vm654_vm2 = vweird.f32 %v776_v25 }
 0x261   :  { %vm655_vm4 = vmor %vm653_vm3, %vm654_vm2 }
 0x262   :  { %v650_v3 = vsub.f32 1.0, %v649_v2 }
 0x264   :  { %v651_v39 = vmul.f32 %v776_v25, %v650_v3 }
 0x266   :  { %v652_v6 = vadd.f32 %v776_v25, %v651_v39 }
 0x268   :  { %v656_v8 = vsel %vm655_vm4, %v776_v25, %v652_v6 }
 0x269   :  { %v661_v10 = vsel %vm658_vm5, %v660_v7, %v656_v8 }
 0x26a   :  { %663 = vst [vmem:[#allocation2] sm:$0x1] %v661_v10 }
 0x26b   :  { %674 = dma.vmem_to_hbm [thread:$0]  %s670_s29, 16, %s672_s5, [#allocation3]  }
 0x26c   :  { %801 = dma.done.wait [#allocation3], 16  }
 0x26d   :  { %802 = vsyncadd [#allocation3], 4294967280 }
 0x26e   :  { %679 = vsyncpa [#allocation3], 1 }

</bundles_post_ra>
